<compile_context>
chip_gen: v7x
topology: tpu7x:2x2x1
jax: 0.10.0
libtpu: 0.0.40
codegen_flags: <defaults>
</compile_context>

<pallas_src>
import functools
import math

import jax
import jax.numpy as jnp
from jax.experimental import pallas as pl
from jax.experimental.pallas import tpu as pltpu

EPS_LN = 1e-5
EPS_BN = 1e-5
VMEM_LIMIT = 32 * 1024 * 1024  # explicit scoped-VMEM cap, safe on v5e/v6e/v7x


def _row_tile(m, target=256):
    """Largest row tile <= target that is a multiple of 8 and divides m."""
    if m <= target:
        return m
    t = (target // 8) * 8
    while t >= 8:
        if m % t == 0:
            return t
        t -= 8
    return m


def _cparams(n_parallel):
    return pltpu.CompilerParams(
        dimension_semantics=("parallel",) * n_parallel,
        vmem_limit_bytes=VMEM_LIMIT)


# ------------------------------------------------------------------
# Pallas kernels
# ------------------------------------------------------------------

def _linear_kernel(*refs, ln, act, res_scale, has_res):
    """[LayerNorm ->] x @ w + b [-> act] [* res_scale] [+ residual].

    Matmul operands are cast to bf16 (f32 accumulation); LN stats, activation,
    scaling and residual add stay in f32.
    """
    idx = 0
    x_ref = refs[idx]; idx += 1
    if ln:
        g_ref = refs[idx]; b_ln_ref = refs[idx + 1]; idx += 2
    w_ref = refs[idx]; b_ref = refs[idx + 1]; idx += 2
    res_ref = None
    if has_res:
        res_ref = refs[idx]; idx += 1
    o_ref = refs[idx]

    x = x_ref[...].astype(jnp.float32)
    if ln:
        mean = jnp.mean(x, axis=-1, keepdims=True)
        var = jnp.mean(jnp.square(x - mean), axis=-1, keepdims=True)
        x = (x - mean) * jax.lax.rsqrt(var + EPS_LN)
        x = x * g_ref[...] + b_ln_ref[...]
    y = jnp.dot(x.astype(jnp.bfloat16), w_ref[...],
                preferred_element_type=jnp.float32)
    y = y + b_ref[...]
    if act == "relu":
        y = jnp.maximum(y, 0.0)
    elif act == "swish":
        y = y * jax.nn.sigmoid(y)
    if res_scale != 1.0:
        y = y * res_scale
    if has_res:
        y = y + res_ref[...]
    o_ref[...] = y.astype(o_ref.dtype)


def _glu_linear_kernel(x_ref, g_ref, b_ref, wa_ref, ba_ref, wb_ref, bb_ref,
                       o_ref):
    """LayerNorm -> (x@wa+ba) * sigmoid(x@wb+bb)  (lane-dense GLU halves)."""
    x = x_ref[...].astype(jnp.float32)
    mean = jnp.mean(x, axis=-1, keepdims=True)
    var = jnp.mean(jnp.square(x - mean), axis=-1, keepdims=True)
    xn = (x - mean) * jax.lax.rsqrt(var + EPS_LN)
    xn = xn * g_ref[...] + b_ref[...]
    xb = xn.astype(jnp.bfloat16)
    a = jnp.dot(xb, wa_ref[...], preferred_element_type=jnp.float32) + ba_ref[...]
    gate = jnp.dot(xb, wb_ref[...], preferred_element_type=jnp.float32) + bb_ref[...]
    o_ref[...] = (a * jax.nn.sigmoid(gate)).astype(o_ref.dtype)


def _layernorm_kernel(x_ref, g_ref, b_ref, o_ref):
    x = x_ref[...].astype(jnp.float32)
    mean = jnp.mean(x, axis=-1, keepdims=True)
    var = jnp.mean(jnp.square(x - mean), axis=-1, keepdims=True)
    y = (x - mean) * jax.lax.rsqrt(var + EPS_LN)
    o_ref[...] = (y * g_ref[...] + b_ref[...]).astype(o_ref.dtype)


def _pos_score_kernel(q_ref, p_ref, vb_ref, o_ref):
    """pos_score = (q + v_bias) @ pos_emb^T for one (batch, head)."""
    q = (q_ref[...] + vb_ref[...]).astype(jnp.bfloat16)   # (T, d)
    p = p_ref[...].astype(jnp.bfloat16)                   # (T, d)
    o_ref[...] = jax.lax.dot_general(
        q, p, (((1,), (1,)), ((), ())), preferred_element_type=jnp.float32)


def _attn_kernel(q_ref, k_ref, v_ref, ps_ref, u_ref, o_ref, *, scale):
    """Fused: content score + shifted pos score + softmax + context matmul."""
    q = (q_ref[...] + u_ref[...]).astype(jnp.bfloat16)     # (T, d)
    k = k_ref[...].astype(jnp.bfloat16)                    # (T, d)
    s = jax.lax.dot_general(
        q, k, (((1,), (1,)), ((), ())), preferred_element_type=jnp.float32)
    s = (s + ps_ref[...]) * scale
    s = s - jnp.max(s, axis=-1, keepdims=True)
    e = jnp.exp(s)
    p = e * pl.reciprocal(jnp.sum(e, axis=-1, keepdims=True), approx=True)
    ctx = jax.lax.dot_general(
        p.astype(jnp.bfloat16), v_ref[...].astype(jnp.bfloat16),
        (((1,), (0,)), ((), ())), preferred_element_type=jnp.float32)
    o_ref[...] = ctx.astype(o_ref.dtype)


def _dwconv_kernel(x_ref, w_ref, scale_ref, shift_ref, o_ref, *, K, T, Tp):
    """Depthwise conv1d (time) + folded BatchNorm + Swish for one batch row.

    The padded time tile is loaded once; the K shifted views are produced with
    pltpu.roll along the sublane (time) axis so the shifts go through the XLU
    slot instead of K unaligned sublane loads.
    """
    x = x_ref[...].astype(jnp.float32)                     # (Tp, D)
    acc = x[0:T, :] * w_ref[0:1, :]
    for k in range(1, K):
        xs = pltpu.roll(x, Tp - k, 0)                      # xs[t] = x[t + k]
        acc = acc + xs[0:T, :] * w_ref[k:k + 1, :]
    acc = acc * scale_ref[...] + shift_ref[...]
    acc = acc * jax.nn.sigmoid(acc)                        # Swish
    o_ref[...] = acc.astype(o_ref.dtype)


# ------------------------------------------------------------------
# Pallas wrappers
# ------------------------------------------------------------------

def pallas_linear(x, w, bias, *, gamma=None, beta=None, act="none",
                  residual=None, res_scale=1.0, tile_rows=256):
    M, Kd = x.shape
    N = w.shape[1]
    tm = _row_tile(M, tile_rows)
    inputs = [x]
    in_specs = [pl.BlockSpec((tm, Kd), lambda i: (i, 0))]
    if gamma is not None:
        inputs += [gamma.reshape(1, Kd), beta.reshape(1, Kd)]
        in_specs += [pl.BlockSpec((1, Kd), lambda i: (0, 0)),
                     pl.BlockSpec((1, Kd), lambda i: (0, 0))]
    inputs += [w, bias.reshape(1, N)]
    in_specs += [pl.BlockSpec((Kd, N), lambda i: (0, 0)),
                 pl.BlockSpec((1, N), lambda i: (0, 0))]
    if residual is not None:
        inputs.append(residual)
        in_specs.append(pl.BlockSpec((tm, N), lambda i: (i, 0)))
    kernel = functools.partial(_linear_kernel, ln=gamma is not None, act=act,
                               res_scale=res_scale,
                               has_res=residual is not None)
    return pl.pallas_call(
        kernel,
        out_shape=jax.ShapeDtypeStruct((M, N), jnp.float32),
        grid=(M // tm,),
        in_specs=in_specs,
        out_specs=pl.BlockSpec((tm, N), lambda i: (i, 0)),
        compiler_params=_cparams(1),
    )(*inputs)


def pallas_glu_linear(x, p, *, tile_rows=256):
    M, Kd = x.shape
    N = p["pw1a_w"].shape[1]
    tm = _row_tile(M, tile_rows)
    return pl.pallas_call(
        _glu_linear_kernel,
        out_shape=jax.ShapeDtypeStruct((M, N), jnp.float32),
        grid=(M // tm,),
        in_specs=[pl.BlockSpec((tm, Kd), lambda i: (i, 0)),
                  pl.BlockSpec((1, Kd), lambda i: (0, 0)),
                  pl.BlockSpec((1, Kd), lambda i: (0, 0)),
                  pl.BlockSpec((Kd, N), lambda i: (0, 0)),
                  pl.BlockSpec((1, N), lambda i: (0, 0)),
                  pl.BlockSpec((Kd, N), lambda i: (0, 0)),
                  pl.BlockSpec((1, N), lambda i: (0, 0))],
        out_specs=pl.BlockSpec((tm, N), lambda i: (i, 0)),
        compiler_params=_cparams(1),
    )(x, p["ln_g"].reshape(1, Kd), p["ln_b"].reshape(1, Kd),
      p["pw1a_w"], p["pw1a_b"].reshape(1, N),
      p["pw1b_w"], p["pw1b_b"].reshape(1, N))


def pallas_layernorm(x, g, b, *, tile_rows=512):
    M, D = x.shape
    tm = _row_tile(M, tile_rows)
    return pl.pallas_call(
        _layernorm_kernel,
        out_shape=jax.ShapeDtypeStruct((M, D), jnp.float32),
        grid=(M // tm,),
        in_specs=[pl.BlockSpec((tm, D), lambda i: (i, 0)),
                  pl.BlockSpec((1, D), lambda i: (0, 0)),
                  pl.BlockSpec((1, D), lambda i: (0, 0))],
        out_specs=pl.BlockSpec((tm, D), lambda i: (i, 0)),
        compiler_params=_cparams(1),
    )(x, g.reshape(1, D), b.reshape(1, D))


def pallas_pos_score(qh, ph, vb):
    B, H, T, d = qh.shape
    return pl.pallas_call(
        _pos_score_kernel,
        out_shape=jax.ShapeDtypeStruct((B, H, T, T), jnp.float32),
        grid=(B, H),
        in_specs=[pl.BlockSpec((None, None, T, d), lambda b, h: (b, h, 0, 0)),
                  pl.BlockSpec((None, T, d), lambda b, h: (h, 0, 0)),
                  pl.BlockSpec((1, d), lambda b, h: (h, 0))],
        out_specs=pl.BlockSpec((None, None, T, T), lambda b, h: (b, h, 0, 0)),
        compiler_params=_cparams(2),
    )(qh, ph, vb)


def pallas_attention(qh, kh, vh, ps, u, *, scale):
    B, H, T, d = qh.shape
    spec_qkv = pl.BlockSpec((None, None, T, d), lambda b, h: (b, h, 0, 0))
    return pl.pallas_call(
        functools.partial(_attn_kernel, scale=scale),
        out_shape=jax.ShapeDtypeStruct((B, H, T, d), jnp.float32),
        grid=(B, H),
        in_specs=[spec_qkv, spec_qkv, spec_qkv,
                  pl.BlockSpec((None, None, T, T), lambda b, h: (b, h, 0, 0)),
                  pl.BlockSpec((1, d), lambda b, h: (h, 0))],
        out_specs=spec_qkv,
        compiler_params=_cparams(2),
    )(qh, kh, vh, ps, u)


def pallas_dwconv(x_pad, w, scale, shift, *, T, K):
    B, Tp, D = x_pad.shape
    return pl.pallas_call(
        functools.partial(_dwconv_kernel, K=K, T=T, Tp=Tp),
        out_shape=jax.ShapeDtypeStruct((B, T, D), jnp.float32),
        grid=(B,),
        in_specs=[pl.BlockSpec((None, Tp, D), lambda b: (b, 0, 0)),
                  pl.BlockSpec((K, D), lambda b: (0, 0)),
                  pl.BlockSpec((1, D), lambda b: (0, 0)),
                  pl.BlockSpec((1, D), lambda b: (0, 0))],
        out_specs=pl.BlockSpec((None, T, D), lambda b: (b, 0, 0)),
        compiler_params=_cparams(1),
    )(x_pad, w, scale.reshape(1, D), shift.reshape(1, D))


# ------------------------------------------------------------------
# JAX glue (im2col / relative shift / head split-merge / parameter setup)
# ------------------------------------------------------------------

def im2col(x, k=3, s=2):
    """x: (B, C, H, W) -> patches (B, Ho, Wo, C*k*k), flattened (C, kh, kw)."""
    # TODO(synk): patch extraction stays in XLA; folding it into the matmul's
    # index_map would make the subsampling path fully Pallas.
    B, C, H, W = x.shape
    Ho = (H - k) // s + 1
    Wo = (W - k) // s + 1
    cols = []
    for kt in range(k):
        for kf in range(k):
            cols.append(x[:, :, kt:kt + s * (Ho - 1) + 1:s,
                           kf:kf + s * (Wo - 1) + 1:s])
    p = jnp.stack(cols, axis=-1)                       # (B, C, Ho, Wo, k*k)
    p = p.transpose(0, 2, 3, 1, 4).reshape(B, Ho, Wo, C * k * k)
    return p


def relative_shift(pos_score):
    """Transformer-XL style relative shift (same reshape trick as torch)."""
    # TODO(synk): an exact in-kernel shift needs a strided lane roll / gather;
    # the zero-pad + reshape trick is kept in XLA glue for robustness.
    B, H, T1, T2 = pos_score.shape
    zeros = jnp.zeros((B, H, T1, 1), pos_score.dtype)
    padded = jnp.concatenate([zeros, pos_score], axis=-1)
    padded = padded.reshape(B, H, T2 + 1, T1)
    return padded[:, :, 1:, :].reshape(B, H, T1, T2)


def sinusoid_pe(T, D):
    pos = jnp.arange(T, dtype=jnp.float32)[:, None]
    div = jnp.exp(jnp.arange(0, D, 2, dtype=jnp.float32)
                  * (-math.log(10000.0) / D))
    pe = jnp.zeros((T, D), jnp.float32)
    pe = pe.at[:, 0::2].set(jnp.sin(pos * div))
    pe = pe.at[:, 1::2].set(jnp.cos(pos * div))
    return pe


def feed_forward(x, p):
    h = pallas_linear(x, p["w1"], p["b1"],
                      gamma=p["ln_g"], beta=p["ln_b"], act="swish")
    return pallas_linear(h, p["w2"], p["b2"], residual=x, res_scale=0.5)


def mhsa(x, p, B, T, D, H):
    d = D // H
    scale = 1.0 / math.sqrt(D)

    # Fused LayerNorm + concatenated Q/K/V projection: one pass over x.
    qkv = pallas_linear(x, p["wqkv"], p["bqkv"],
                        gamma=p["ln_g"], beta=p["ln_b"])          # (B*T, 3D)
    qkv = qkv.reshape(B, T, 3, H, d).transpose(2, 0, 3, 1, 4)     # (3,B,H,T,d)
    qh, kh, vh = qkv[0], qkv[1], qkv[2]

    # Positional encoding projected once at (T, D), then split per head.
    pe = sinusoid_pe(T, D)
    pe = pallas_linear(pe, p["wp"], jnp.zeros((D,), jnp.float32))  # no bias
    ph = pe.reshape(T, H, d).transpose(1, 0, 2)                    # (H, T, d)

    pos_score = pallas_pos_score(qh, ph, p["vb"])                  # (B,H,T,T)
    ps = relative_shift(pos_score)
    ctx = pallas_attention(qh, kh, vh, ps, p["u"], scale=scale)    # (B,H,T,d)

    ctx = ctx.transpose(0, 2, 1, 3).reshape(B * T, D)
    return pallas_linear(ctx, p["wo"], p["bo"], residual=x)


def conv_module(x, p, B, T, D, K):
    y = pallas_glu_linear(x, p)                                    # (B*T, D)
    pad = (K - 1) // 2
    Tp = T + 2 * pad
    Tp_pad = ((Tp + 7) // 8) * 8          # align the time axis to sublanes
    y_pad = jnp.pad(y.reshape(B, T, D),
                    ((0, 0), (pad, pad + (Tp_pad - Tp)), (0, 0)))
    z = pallas_dwconv(y_pad, p["dw_w"], p["bn_scale"], p["bn_shift"], T=T, K=K)
    return pallas_linear(z.reshape(B * T, D), p["pw2_w"], p["pw2_b"],
                         residual=x)


def conformer_block(x, p, B, T, D, H, K):
    x = feed_forward(x, p["ff1"])
    x = mhsa(x, p["mhsa"], B, T, D, H)
    x = conv_module(x, p["conv"], B, T, D, K)
    x = feed_forward(x, p["ff2"])
    return pallas_layernorm(x, p["ln_g"], p["ln_b"])


def conf_enc_forward(params, inputs, input_lengths):
    """Equivalent of ConfEnc.forward(inputs, input_lengths) in eval mode."""
    B, T, Din = inputs.shape
    C = params["encoder_dim"]
    H = params["num_heads"]
    K = params["kernel_size"]

    # --- Conv2dSubsampling: conv(k=3,s=2) + ReLU, twice (im2col + matmul) ---
    x = inputs[:, None, :, :]                          # (B, 1, T, Din)  NCHW
    p1 = im2col(x)                                     # (B, T1, F1, 9)
    _, T1, F1, K1 = p1.shape
    h1 = pallas_linear(p1.reshape(-1, K1), params["conv1_w"],
                       params["conv1_b"], act="relu")
    h1 = h1.reshape(B, T1, F1, C).transpose(0, 3, 1, 2)   # (B, C, T1, F1)
    p2 = im2col(h1)                                       # (B, T2, F2, C*9)
    _, T2, F2, K2 = p2.shape
    h2 = pallas_linear(p2.reshape(-1, K2), params["conv2_w"],
                       params["conv2_b"], act="relu")
    # (B, C, T2, F2) -> permute(0,2,1,3) -> flatten (C, F2), as in torch
    h2 = h2.reshape(B, T2, F2, C).transpose(0, 1, 3, 2).reshape(B, T2, C * F2)
    out_len = (input_lengths >> 2) - 1

    # --- input projection (dropout = identity) ---
    xf = pallas_linear(h2.reshape(B * T2, C * F2),
                       params["proj_w"], params["proj_b"])

    # --- Conformer blocks ---
    for lp in params["layers"]:
        xf = conformer_block(xf, lp, B, T2, C, H, K)

    return xf.reshape(B, T2, C), out_len


# ------------------------------------------------------------------
# Deterministic parameter init (synthetic; shapes per ConformerEncoder)
# Weights (matmul operands) stored bf16; biases / LN / BN / biases-u-v in f32.
# ------------------------------------------------------------------

def init_params(key, input_dim, encoder_dim, num_layers,
                num_heads=4, kernel_size=31):
    D = encoder_dim
    H = num_heads
    d = D // H
    freq = ((input_dim - 1) // 2 - 1) // 2
    keys = iter(jax.random.split(key, 1024))

    def w(shape, scale=0.02):   # bf16 matmul weight, f32 init then cast
        return (scale * jax.random.normal(next(keys), shape,
                                          jnp.float32)).astype(jnp.bfloat16)

    def wf(shape, scale=0.02):  # f32 (elementwise) weight
        return scale * jax.random.normal(next(keys), shape, jnp.float32)

    def zeros(s): return jnp.zeros(s, jnp.float32)
    def ones(s): return jnp.ones(s, jnp.float32)

    def ff_params():
        return dict(ln_g=ones((D,)), ln_b=zeros((D,)),
                    w1=w((D, 4 * D)), b1=zeros((4 * D,)),
                    w2=w((4 * D, D)), b2=zeros((D,)))

    params = dict(
        encoder_dim=D, num_heads=H, kernel_size=kernel_size,
        conv1_w=w((9, D)), conv1_b=zeros((D,)),
        conv2_w=w((D * 9, D)), conv2_b=zeros((D,)),
        proj_w=w((D * freq, D)), proj_b=zeros((D,)),
        layers=[],
    )
    for _ in range(num_layers):
        params["layers"].append(dict(
            ff1=ff_params(),
            mhsa=dict(ln_g=ones((D,)), ln_b=zeros((D,)),
                      wqkv=w((D, 3 * D)), bqkv=zeros((3 * D,)),
                      wp=w((D, D)),
                      u=wf((H, d)), vb=wf((H, d)),
                      wo=w((D, D)), bo=zeros((D,))),
            conv=dict(ln_g=ones((D,)), ln_b=zeros((D,)),
                      pw1a_w=w((D, D)), pw1a_b=zeros((D,)),
                      pw1b_w=w((D, D)), pw1b_b=zeros((D,)),
                      dw_w=wf((kernel_size, D)),
                      # eval-mode BatchNorm1d folded (mean=0, var=1, w=1, b=0)
                      bn_scale=ones((D,)) / jnp.sqrt(1.0 + EPS_BN),
                      bn_shift=zeros((D,)),
                      pw2_w=w((D, D)), pw2_b=zeros((D,))),
            ff2=ff_params(),
            ln_g=ones((D,)), ln_b=zeros((D,)),
        ))
    return params


# ------------------------------------------------------------------

if __name__ == "__main__":
    B, T, input_dim = 2, 16, 16
    encoder_dim, num_layers = 32, 2

    key = jax.random.PRNGKey(0)
    kx, kp = jax.random.split(key)
    inputs = jax.random.normal(kx, (B, T, input_dim), jnp.float32)
    input_lengths = jnp.array([16, 12], dtype=jnp.int32)

    params = init_params(kp, input_dim, encoder_dim, num_layers)

    out, out_len = conf_enc_forward(params, inputs, input_lengths)
    jax.block_until_ready(out)
    jax.block_until_ready(out_len)

    # out: (B, T'', encoder_dim) = (2, 3, 32); out_len = (lengths >> 2) - 1
    assert out.shape == (B, 3, encoder_dim)
    assert out_len.shape == (B,)
    print("KERNEL_OK")
</pallas_src>

<mosaic_0001>
module attributes {stable_mosaic.version = 11 : i64} {
  func.func @_linear_kernel(%arg0: i32, %arg1: memref<98x9xf32, #tpu.memory_space<vmem>>, %arg2: memref<9x32xbf16, #tpu.memory_space<vmem>>, %arg3: memref<1x32xf32, #tpu.memory_space<vmem>>, %arg4: memref<98x32xf32, #tpu.memory_space<vmem>>) attributes {dimension_semantics = [#tpu.dimension_semantics<parallel>], iteration_bounds = array<i64: 1>, scalar_prefetch = 0 : i64, scratch_operands = 0 : i64, tpu.core_type = #tpu.core_type<tc>, window_params = [{transform_indices = @transform_0, window_bounds = array<i64: 98, 9>}, {pipeline_mode = #tpu.pipeline_mode<synchronous>, transform_indices = @transform_1, window_bounds = array<i64: 9, 32>}, {pipeline_mode = #tpu.pipeline_mode<synchronous>, transform_indices = @transform_2, window_bounds = array<i64: 1, 32>}, {transform_indices = @transform_3, window_bounds = array<i64: 98, 32>}]} {
    %c0 = arith.constant 0 : index
    %c0_0 = arith.constant 0 : index
    %0 = vector.load %arg1[%c0, %c0_0] : memref<98x9xf32, #tpu.memory_space<vmem>>, vector<98x9xf32>
    %1 = arith.truncf %0 : vector<98x9xf32> to vector<98x9xbf16>
    %c0_1 = arith.constant 0 : index
    %c0_2 = arith.constant 0 : index
    %2 = vector.load %arg2[%c0_1, %c0_2] : memref<9x32xbf16, #tpu.memory_space<vmem>>, vector<9x32xbf16>
    %cst = arith.constant dense<0.000000e+00> : vector<98x32xf32>
    %3 = tpu.matmul %1, %2, %cst {dimension_numbers = #tpu.dot_dimension_numbers<[1], [0], [0], [1], [0, 0, 1, 1], [], []>} : vector<98x9xbf16>, vector<9x32xbf16>, vector<98x32xf32> -> vector<98x32xf32>
    %c0_3 = arith.constant 0 : index
    %c0_4 = arith.constant 0 : index
    %4 = vector.load %arg3[%c0_3, %c0_4] : memref<1x32xf32, #tpu.memory_space<vmem>>, vector<1x32xf32>
    %5 = vector.broadcast %4 : vector<1x32xf32> to vector<98x32xf32>
    %6 = arith.addf %3, %5 : vector<98x32xf32>
    %cst_5 = arith.constant 0.000000e+00 : f32
    %7 = vector.broadcast %cst_5 : f32 to vector<98x32xf32>
    %8 = arith.maximumf %6, %7 : vector<98x32xf32>
    %c0_6 = arith.constant 0 : index
    %c0_7 = arith.constant 0 : index
    %9 = vector.load %arg4[%c0_6, %c0_7] : memref<98x32xf32, #tpu.memory_space<vmem>>, vector<98x32xf32>
    tpu.vector_store %arg4[%c0_6, %c0_7], %8 {strides = array<i32>} : memref<98x32xf32, #tpu.memory_space<vmem>>, vector<98x32xf32>,
    return
  }
  func.func @transform_0(%arg0: i32) -> (i32, i32) {
    %c0_i32 = arith.constant 0 : i32
    %c0_i32_0 = arith.constant 0 : i32
    return %arg0, %c0_i32 : i32, i32
  }
  func.func @transform_1(%arg0: i32) -> (i32, i32) {
    %c0_i32 = arith.constant 0 : i32
    %c0_i32_0 = arith.constant 0 : i32
    %c0_i32_1 = arith.constant 0 : i32
    return %c0_i32, %c0_i32_0 : i32, i32
  }
  func.func @transform_2(%arg0: i32) -> (i32, i32) {
    %c0_i32 = arith.constant 0 : i32
    %c0_i32_0 = arith.constant 0 : i32
    %c0_i32_1 = arith.constant 0 : i32
    return %c0_i32, %c0_i32_0 : i32, i32
  }
  func.func @transform_3(%arg0: i32) -> (i32, i32) {
    %c0_i32 = arith.constant 0 : i32
    %c0_i32_0 = arith.constant 0 : i32
    return %arg0, %c0_i32 : i32, i32
  }
}

</mosaic_0001>

<bundles_post_ra>
// kernel: tpu_custom_call.1
= control target key start
LH: loop header
LB: loop body
LE: loop exit
PB: predicated region body
PF: predicated region fallthrough
CT: control target
= control target key end

     0   :  { %vm71_vm0 = vcmask 1043456   ;;  %vm72_vm1 = vcmask 1044480   ;;  %v251_v0 = vmov 0.0   ;;  %v252_v2 = vmov 65535   ;;  %s399_s1 = inlined_call_operand.vmem [shape: bf16[9,32], index: 1, kind: input, shape index: {}]   ;;  %s400_s0 = inlined_call_operand.vmem [shape: f32[98,9], index: 0, kind: input, shape index: {}]   ;;  %s401_s2 = inlined_call_operand.vmem [shape: f32[1,32], index: 2, kind: input, shape index: {}]   ;;  %s402_s3 = inlined_call_operand.vmem [shape: f32[98,32], index: 3, kind: output, shape index: {}]  }
   0x1   :  { %215 = vmatprep.subr.bf16.mxu0 %v251_v0  ;;  %v250_v1 = vld [vmem:[%s399_s1] sm:$0x1f]   ;;  %245 = vmatprep.subr.bf16.mxu1 %v251_v0  ;;  %v73_v3 = vsel %vm71_vm0, 4294967295, %v252_v2  ;;  %v16_v5 = vld [vmem:[%s400_s0 + $0x8] sm:$0xff]  ;;  %vm253_vm2 = vmmov 0   ;;  %vm49_vm3 = vcmask 72704  }
   0x2   :  { %v15_v4 = vld [vmem:[%s400_s0] sm:$0xff]  ;;  %v74_v7 = vsel %vm72_vm1, %v73_v3, 0  ;;  %217 = vmatprep.mubr.msk.bf16.mxu0 %vm253_vm2, %v251_v0  ;;  %233 = vmatprep.mubr.msk.bf16.mxu1 %vm253_vm2, %v251_v0  ;;  %v24_v8 = vld [vmem:[%s400_s0 + $0x48] sm:$0xff]  ;;  %v17_v12 = vld [vmem:[%s400_s0 + $0x10] sm:$0xff]  ;;  %vm179_vm4 = vcmask 261120   ;;  %vm192_vm5 = vcmask 254976  }
   0x3   :  { %v23_v6 = vld [vmem:[%s400_s0 + $0x40] sm:$0xff]  ;;  %v76_v9 = vand.u32 %v250_v1, %v74_v7  ;;  %v28_v10 = vpack.c.bf16 %v16_v5, %v15_v4  ;;  %v18_v13 = vld [vmem:[%s400_s0 + $0x18] sm:$0xff]  ;;  %v25_v14 = vld [vmem:[%s400_s0 + $0x50] sm:$0xff] }
   0x4   :  { %v32_v11 = vpack.c.bf16 %v24_v8, %v23_v6  ;;  %v26_v15 = vld [vmem:[%s400_s0 + $0x58] sm:$0xff]  ;;  %v29_v16 = vpack.c.bf16 %v18_v13, %v17_v12  ;;  %v19_v18 = vld [vmem:[%s400_s0 + $0x20] sm:$0xff]  ;;  %v20_v19 = vld [vmem:[%s400_s0 + $0x28] sm:$0xff] }
   0x5   :  { %216 = vmatpush3.bf16.msra.mxu0 %v76_v9  ;;  %246 = vmatpush3.bf16.msra.mxu1 %v76_v9  ;;  %v33_v17 = vpack.c.bf16 %v26_v15, %v25_v14  ;;  %v27_v20 = vld [vmem:[%s400_s0 + $0x60] sm:$0x3]  ;;  %v30_v21 = vpack.c.bf16 %v20_v19, %v19_v18  ;;  %v21_v23 = vld [vmem:[%s400_s0 + $0x30] sm:$0xff]  ;;  %v22_v24 = vld [vmem:[%s400_s0 + $0x38] sm:$0xff] }
   0x6   :  { %v34_v22 = vpack.c.bf16 %v27_v20, %v27_v20  ;;  %v31_v25 = vpack.c.bf16 %v22_v24, %v21_v23  ;;  %v333_v26 = vld [vmem:[%s401_s2] ss:$0 sm:$0xff] }
   0x8   :  { %218 = vmatmul.mubr.msk.bf16.vlgmr.msra.gmra.mrb[0].mxu0 %vm49_vm3, %v28_v10  ;;  %234 = vmatmul.mubr.msk.bf16.vlgmr.msra.gmra.mrb[0].mxu1 %vm49_vm3, %v32_v11 }
   0x9   :  { %221 = vmatprep.mubr.msk.bf16.mxu0 %vm253_vm2, %v251_v0  ;;  %237 = vmatprep.mubr.msk.bf16.mxu1 %vm253_vm2, %v251_v0 }
  0x10   :  { %222 = vmatmul.mubr.msk.bf16.gmra.mrb[4].mxu0 %vm49_vm3, %v29_v16  ;;  %238 = vmatmul.mubr.msk.bf16.gmra.mrb[4].mxu1 %vm49_vm3, %v33_v17 }
  0x11   :  { %225 = vmatprep.mubr.msk.bf16.mxu0 %vm253_vm2, %v251_v0  ;;  %241 = vmatprep.mubr.msk.bf16.mxu1 %vm253_vm2, %v251_v0 }
  0x18   :  { %226 = vmatmul.mubr.msk.bf16.gmra.mrb[8].mxu0 %vm49_vm3, %v30_v21  ;;  %242 = vmatmul.mubr.msk.bf16.gmra.mrb[8].mxu1 %vm49_vm3, %v34_v22 }
  0x19   :  { %229 = vmatprep.mubr.msk.bf16.mxu0 %vm253_vm2, %v251_v0 }
  0x20   :  { %230 = vmatmul.mubr.msk.bf16.gmra.mrb[12].mxu0 %vm49_vm3, %v31_v25 }
  0xdb   :  { %v112_v27 = vpop.f32.mrb[0].mxu0  ;;  %v144_v28 = vpop.f32.mrb[0].mxu1 }
  0xdc   :  { %v113_v29 = vadd.f32 %v333_v26, %v112_v27  ;;  %v219_v30 = vpop.f32.mrb[1].mxu0  ;;  %v145_v31 = vadd.f32 %v333_v26, %v144_v28  ;;  %v235_v32 = vpop.f32.mrb[1].mxu1 }
  0xdd   :  { %v115_v33 = vpop.f32.mrb[2].mxu0  ;;  %v147_v34 = vpop.f32.mrb[2].mxu1 }
  0xde   :  { %v166_v35 = vmax.f32 %v113_v29, 0.0  ;;  %v116_v36 = vadd.f32 %v333_v26, %v115_v33  ;;  %v220_v37 = vpop.f32.mrb[3].mxu0  ;;  %v174_v38 = vmax.f32 %v145_v31, 0.0  ;;  %v148_v39 = vadd.f32 %v333_v26, %v147_v34  ;;  %v236_v40 = vpop.f32.mrb[3].mxu1 }
  0xe0   :  { %180 = vst.msk [vmem:[%s402_s3] sm:$0xff] %vm179_vm4, %v166_v35  ;;  %v167_v41 = vmax.f32 %v116_v36, 0.0  ;;  %188 = vst.msk [vmem:[%s402_s3 + $0x40] sm:$0xff] %vm179_vm4, %v174_v38  ;;  %v175_v42 = vmax.f32 %v148_v39, 0.0 }
  0xe2   :  { %181 = vst.msk [vmem:[%s402_s3 + $0x8] sm:$0xff] %vm179_vm4, %v167_v41  ;;  %189 = vst.msk [vmem:[%s402_s3 + $0x48] sm:$0xff] %vm179_vm4, %v175_v42 }
  0xe3   :  { %v120_v43 = vpop.f32.mrb[4].mxu0  ;;  %v152_v44 = vpop.f32.mrb[4].mxu1 }
  0xe4   :  { %v121_v45 = vadd.f32 %v333_v26, %v120_v43  ;;  %v223_v46 = vpop.f32.mrb[5].mxu0  ;;  %v153_v47 = vadd.f32 %v333_v26, %v152_v44  ;;  %v239_v48 = vpop.f32.mrb[5].mxu1 }
  0xe5   :  { %v123_v49 = vpop.f32.mrb[6].mxu0  ;;  %v155_v50 = vpop.f32.mrb[6].mxu1 }
  0xe6   :  { %v168_v51 = vmax.f32 %v121_v45, 0.0  ;;  %v124_v52 = vadd.f32 %v333_v26, %v123_v49  ;;  %v224_v53 = vpop.f32.mrb[7].mxu0  ;;  %v176_v54 = vmax.f32 %v153_v47, 0.0  ;;  %v156_v55 = vadd.f32 %v333_v26, %v155_v50  ;;  %v240_v56 = vpop.f32.mrb[7].mxu1 }
  0xe8   :  { %182 = vst.msk [vmem:[%s402_s3 + $0x10] sm:$0xff] %vm179_vm4, %v168_v51  ;;  %v169_v57 = vmax.f32 %v124_v52, 0.0  ;;  %190 = vst.msk [vmem:[%s402_s3 + $0x50] sm:$0xff] %vm179_vm4, %v176_v54  ;;  %v177_v58 = vmax.f32 %v156_v55, 0.0 }
  0xea   :  { %183 = vst.msk [vmem:[%s402_s3 + $0x18] sm:$0xff] %vm179_vm4, %v169_v57  ;;  %191 = vst.msk [vmem:[%s402_s3 + $0x58] sm:$0xff] %vm179_vm4, %v177_v58 }
  0xeb   :  { %v128_v59 = vpop.f32.mrb[8].mxu0  ;;  %v160_v60 = vpop.f32.mrb[8].mxu1 }
  0xec   :  { %v129_v61 = vadd.f32 %v333_v26, %v128_v59  ;;  %v227_v62 = vpop.f32.mrb[9].mxu0  ;;  %v161_v63 = vadd.f32 %v333_v26, %v160_v60  ;;  %v243_v0 = vpop.f32.mrb[9].mxu1 }
  0xed   :  { %v131_v1 = vpop.f32.mrb[10].mxu0  ;;  %v163_v2 = vpop.f32.mrb[10].mxu1 }
  0xee   :  { %v170_v3 = vmax.f32 %v129_v61, 0.0  ;;  %v132_v4 = vadd.f32 %v333_v26, %v131_v1  ;;  %v228_v5 = vpop.f32.mrb[11].mxu0  ;;  %v178_v6 = vmax.f32 %v161_v63, 0.0  ;;  %v244_v7 = vpop.f32.mrb[11].mxu1 }
  0xf0   :  { %184 = vst.msk [vmem:[%s402_s3 + $0x20] sm:$0xff] %vm179_vm4, %v170_v3  ;;  %v171_v8 = vmax.f32 %v132_v4, 0.0 }
  0xf1   :  { %193 = vst.msk [vmem:[%s402_s3 + $0x60] sm:$0x3] %vm192_vm5, %v178_v6 }
  0xf2   :  { %185 = vst.msk [vmem:[%s402_s3 + $0x28] sm:$0xff] %vm179_vm4, %v171_v8 }
  0xf3   :  { %v136_v9 = vpop.f32.mrb[12].mxu0 }
  0xf4   :  { %v137_v10 = vadd.f32 %v333_v26, %v136_v9  ;;  %v231_v11 = vpop.f32.mrb[13].mxu0 }
  0xf5   :  { %v139_v12 = vpop.f32.mrb[14].mxu0 }
  0xf6   :  { %v172_v13 = vmax.f32 %v137_v10, 0.0  ;;  %v140_v14 = vadd.f32 %v333_v26, %v139_v12  ;;  %v232_v15 = vpop.f32.mrb[15].mxu0 }
  0xf8   :  { %186 = vst.msk [vmem:[%s402_s3 + $0x30] sm:$0xff] %vm179_vm4, %v172_v13  ;;  %v173_v16 = vmax.f32 %v140_v14, 0.0 }
  0xfa   :  { %187 = vst.msk [vmem:[%s402_s3 + $0x38] sm:$0xff] %vm179_vm4, %v173_v16 }

</bundles_post_ra>
